<compile_context>
chip_gen: v5e
topology: v5e:2x2
jax: 0.10.0
libtpu: 0.0.40
codegen_flags: <defaults>
</compile_context>

<pallas_src>
import jax
import jax.numpy as jnp
from jax.experimental import pallas as pl
from jax.experimental.pallas import tpu as pltpu


# ---------------------------------------------------------------------------
# Fused Pallas kernel:  out = relu( relu(x @ w1 + b1) @ w2 + b2 )
# ---------------------------------------------------------------------------
def _fused_mlp_kernel(x_ref, w1_ref, b1_ref, w2_ref, b2_ref, o_ref):
    x = x_ref[...]            # (tm, D) f32
    w1 = w1_ref[...]          # (D, H)  f32

    # ---- Layer 1: K = D (tiny, e.g. 3) -> unrolled VPU broadcast-FMAs.
    # Exact f32; avoids an MXU weight push/pop for a <3%-utilized contraction.
    D = x.shape[1]
    h = x[:, 0:1] * w1[0:1, :]
    for d in range(1, D):                       # D is static -> fully unrolled
        h = h + x[:, d:d+1] * w1[d:d+1, :]
    h = jnp.maximum(h + b1_ref[...], 0.0)       # (tm, H), stays in VMEM/vregs

    # ---- Layer 2: (tm, H) @ (H, E) on the MXU, f32 accumulation, full precision.
    o = jnp.dot(h, w2_ref[...],
                preferred_element_type=jnp.float32,
                precision=jax.lax.Precision.HIGHEST)
    o_ref[...] = jnp.maximum(o + b2_ref[...], 0.0).astype(o_ref.dtype)


_TM_CAP = 8192  # per-step footprint ~<8 MiB -> safe under v5e's 16 MiB scoped VMEM


def _pick_tm(M):
    """Right-size the M tile.

    * M <= 4096: one grid step with tm = M (legal since it equals the full dim) —
      a standalone launch is fixed-overhead-bound anyway at this size.
    * Larger M: tile ~= M/2 (8-aligned), capped at _TM_CAP.  Guarantees >= 2 grid
      steps (megacore sharding on v7x) while keeping per-step bytes large enough
      to amortize the ~0.35us fixed per-step pipeline overhead.
    """
    if M <= 4096:
        return M
    half = ((-(-M // 2)) + 7) // 8 * 8
    return min(_TM_CAP, half)


def fused_mlp(x, w1, b1, w2, b2):
    """x: (M, D) f32; w1: (D, H); b1: (1, H); w2: (H, E); b2: (1, E) -> (M, E) f32."""
    M, D = x.shape
    H = w1.shape[1]
    E = w2.shape[1]

    tm = _pick_tm(M)
    grid_m = pl.cdiv(M, tm)   # ragged last block allowed: OOB rows masked on store

    cost = pl.CostEstimate(
        flops=2 * M * (D * H + H * E),
        transcendentals=0,
        bytes_accessed=4 * (M * D + D * H + H + H * E + E + M * E),
    )

    return pl.pallas_call(
        _fused_mlp_kernel,
        out_shape=jax.ShapeDtypeStruct((M, E), jnp.float32),
        grid_spec=pltpu.PrefetchScalarGridSpec(
            num_scalar_prefetch=0,
            grid=(grid_m,),
            in_specs=[
                pl.BlockSpec((tm, D), lambda i: (i, 0)),   # activation tile
                pl.BlockSpec((D, H), lambda i: (0, 0)),    # fc1 weight (resident)
                pl.BlockSpec((1, H), lambda i: (0, 0)),    # fc1 bias row
                pl.BlockSpec((H, E), lambda i: (0, 0)),    # fc2 weight (resident)
                pl.BlockSpec((1, E), lambda i: (0, 0)),    # fc2 bias row
            ],
            out_specs=pl.BlockSpec((tm, E), lambda i: (i, 0)),
        ),
        compiler_params=pltpu.CompilerParams(
            dimension_semantics=("parallel",),
            vmem_limit_bytes=32 * 1024 * 1024,
        ),
        cost_estimate=cost,
    )(x, w1, b1, w2, b2)


# ---------------------------------------------------------------------------
# Parameters: PyTorch nn.Linear layout, pre-transformed ONCE to matmul layout.
# ---------------------------------------------------------------------------
def prepare_params(fc1_w, fc1_b, fc2_w, fc2_b):
    """One-time weight pre-transform (done outside the jitted forward)."""
    return {
        "w1": jnp.transpose(fc1_w),          # (in, hidden)
        "b1": fc1_b.reshape(1, -1),          # (1, hidden)
        "w2": jnp.transpose(fc2_w),          # (hidden, embed)
        "b2": fc2_b.reshape(1, -1),          # (1, embed)
    }


def init_params(key, input_dim=3, hidden_dim=64, embed_dim=32):
    k1, k2, k3, k4 = jax.random.split(key, 4)
    # PyTorch nn.Linear layout: weight (out_features, in_features), bias (out_features,)
    fc1_w = 0.1 * jax.random.normal(k1, (hidden_dim, input_dim), jnp.float32)
    fc1_b = 0.1 * jax.random.normal(k2, (hidden_dim,), jnp.float32)
    fc2_w = 0.1 * jax.random.normal(k3, (embed_dim, hidden_dim), jnp.float32)
    fc2_b = 0.1 * jax.random.normal(k4, (embed_dim,), jnp.float32)
    return prepare_params(fc1_w, fc1_b, fc2_w, fc2_b)


# ---------------------------------------------------------------------------
# Forward pass matching ProductEncoder.forward
# ---------------------------------------------------------------------------
@jax.jit
def product_encoder_forward(params, prod_features):
    """prod_features: (..., input_dim) float32 -> (..., embed_dim) float32."""
    lead = prod_features.shape[:-1]
    D = prod_features.shape[-1]
    x = prod_features.reshape(-1, D).astype(jnp.float32)
    out = fused_mlp(x, params["w1"], params["b1"], params["w2"], params["b2"])
    return out.reshape(*lead, out.shape[-1])


def _reference_forward(params, prod_features):
    """Pure-JAX reference for validation."""
    x = prod_features.astype(jnp.float32)
    h = jnp.maximum(x @ params["w1"] + params["b1"], 0.0)
    return jnp.maximum(h @ params["w2"] + params["b2"], 0.0)


# ---------------------------------------------------------------------------
if __name__ == "__main__":
    key = jax.random.PRNGKey(0)
    pkey, xkey, xkey2 = jax.random.split(key, 3)

    params = init_params(pkey, input_dim=3, hidden_dim=64, embed_dim=32)

    # Small demo shape: batch of 2, 8 products each, 3 features per product.
    prod_features = jax.random.normal(xkey, (2, 8, 3), jnp.float32)
    out = product_encoder_forward(params, prod_features)
    out = jax.block_until_ready(out)

    assert out.shape == (2, 8, 32), out.shape
    assert out.dtype == jnp.float32
    assert bool(jnp.all(jnp.isfinite(out)))
    assert bool(jnp.all(out >= 0.0))  # final ReLU
    ref = _reference_forward(params, prod_features)
    assert bool(jnp.allclose(out, ref, atol=1e-5, rtol=1e-5))

    # Ragged multi-step path: M = 4101 -> 2 grid steps, partial last block
    # (exercises the no-pad / masked-store behavior flagged in the review).
    prod_features2 = jax.random.normal(xkey2, (4101, 3), jnp.float32)
    out2 = jax.block_until_ready(product_encoder_forward(params, prod_features2))
    ref2 = _reference_forward(params, prod_features2)
    assert out2.shape == (4101, 32)
    assert bool(jnp.all(jnp.isfinite(out2)))
    assert bool(jnp.allclose(out2, ref2, atol=1e-5, rtol=1e-5))

    print("KERNEL_OK")
</pallas_src>

<mosaic_0001>
module attributes {stable_mosaic.version = 11 : i64} {
  func.func @_fused_mlp_kernel(%arg0: i32, %arg1: memref<16x3xf32, #tpu.memory_space<vmem>>, %arg2: memref<3x64xf32, #tpu.memory_space<vmem>>, %arg3: memref<1x64xf32, #tpu.memory_space<vmem>>, %arg4: memref<64x32xf32, #tpu.memory_space<vmem>>, %arg5: memref<1x32xf32, #tpu.memory_space<vmem>>, %arg6: memref<16x32xf32, #tpu.memory_space<vmem>>) attributes {dimension_semantics = [#tpu.dimension_semantics<parallel>], iteration_bounds = array<i64: 1>, scalar_prefetch = 0 : i64, scratch_operands = 0 : i64, tpu.core_type = #tpu.core_type<tc>, window_params = [{transform_indices = @transform_0, window_bounds = array<i64: 16, 3>}, {pipeline_mode = #tpu.pipeline_mode<synchronous>, transform_indices = @transform_1, window_bounds = array<i64: 3, 64>}, {pipeline_mode = #tpu.pipeline_mode<synchronous>, transform_indices = @transform_2, window_bounds = array<i64: 1, 64>}, {pipeline_mode = #tpu.pipeline_mode<synchronous>, transform_indices = @transform_3, window_bounds = array<i64: 64, 32>}, {pipeline_mode = #tpu.pipeline_mode<synchronous>, transform_indices = @transform_4, window_bounds = array<i64: 1, 32>}, {transform_indices = @transform_5, window_bounds = array<i64: 16, 32>}]} {
    %c0 = arith.constant 0 : index
    %c0_0 = arith.constant 0 : index
    %0 = vector.load %arg1[%c0, %c0_0] : memref<16x3xf32, #tpu.memory_space<vmem>>, vector<16x3xf32>
    %c0_1 = arith.constant 0 : index
    %c0_2 = arith.constant 0 : index
    %1 = vector.load %arg2[%c0_1, %c0_2] : memref<3x64xf32, #tpu.memory_space<vmem>>, vector<3x64xf32>
    %2 = vector.extract_strided_slice %0 {offsets = [0, 0], sizes = [16, 1], strides = [1, 1]} : vector<16x3xf32> to vector<16x1xf32>
    %3 = vector.extract_strided_slice %1 {offsets = [0, 0], sizes = [1, 64], strides = [1, 1]} : vector<3x64xf32> to vector<1x64xf32>
    %4 = vector.broadcast %2 : vector<16x1xf32> to vector<16x64xf32>
    %5 = vector.broadcast %3 : vector<1x64xf32> to vector<16x64xf32>
    %6 = arith.mulf %4, %5 : vector<16x64xf32>
    %7 = vector.extract_strided_slice %0 {offsets = [0, 1], sizes = [16, 1], strides = [1, 1]} : vector<16x3xf32> to vector<16x1xf32>
    %8 = vector.extract_strided_slice %1 {offsets = [1, 0], sizes = [1, 64], strides = [1, 1]} : vector<3x64xf32> to vector<1x64xf32>
    %9 = vector.broadcast %7 : vector<16x1xf32> to vector<16x64xf32>
    %10 = vector.broadcast %8 : vector<1x64xf32> to vector<16x64xf32>
    %11 = arith.mulf %9, %10 : vector<16x64xf32>
    %12 = arith.addf %6, %11 : vector<16x64xf32>
    %13 = vector.extract_strided_slice %0 {offsets = [0, 2], sizes = [16, 1], strides = [1, 1]} : vector<16x3xf32> to vector<16x1xf32>
    %14 = vector.extract_strided_slice %1 {offsets = [2, 0], sizes = [1, 64], strides = [1, 1]} : vector<3x64xf32> to vector<1x64xf32>
    %15 = vector.broadcast %13 : vector<16x1xf32> to vector<16x64xf32>
    %16 = vector.broadcast %14 : vector<1x64xf32> to vector<16x64xf32>
    %17 = arith.mulf %15, %16 : vector<16x64xf32>
    %18 = arith.addf %12, %17 : vector<16x64xf32>
    %c0_3 = arith.constant 0 : index
    %c0_4 = arith.constant 0 : index
    %19 = vector.load %arg3[%c0_3, %c0_4] : memref<1x64xf32, #tpu.memory_space<vmem>>, vector<1x64xf32>
    %20 = vector.broadcast %19 : vector<1x64xf32> to vector<16x64xf32>
    %21 = arith.addf %18, %20 : vector<16x64xf32>
    %cst = arith.constant 0.000000e+00 : f32
    %22 = vector.broadcast %cst : f32 to vector<16x64xf32>
    %23 = arith.maximumf %21, %22 : vector<16x64xf32>
    %c0_5 = arith.constant 0 : index
    %c0_6 = arith.constant 0 : index
    %24 = vector.load %arg4[%c0_5, %c0_6] : memref<64x32xf32, #tpu.memory_space<vmem>>, vector<64x32xf32>
    %cst_7 = arith.constant dense<0.000000e+00> : vector<16x32xf32>
    %25 = tpu.matmul %23, %24, %cst_7 {dimension_numbers = #tpu.dot_dimension_numbers<[1], [0], [0], [1], [0, 0, 1, 1], [], []>, precision = #tpu.contract_precision<fp32>} : vector<16x64xf32>, vector<64x32xf32>, vector<16x32xf32> -> vector<16x32xf32>
    %c0_8 = arith.constant 0 : index
    %c0_9 = arith.constant 0 : index
    %26 = vector.load %arg5[%c0_8, %c0_9] : memref<1x32xf32, #tpu.memory_space<vmem>>, vector<1x32xf32>
    %27 = vector.broadcast %26 : vector<1x32xf32> to vector<16x32xf32>
    %28 = arith.addf %25, %27 : vector<16x32xf32>
    %cst_10 = arith.constant 0.000000e+00 : f32
    %29 = vector.broadcast %cst_10 : f32 to vector<16x32xf32>
    %30 = arith.maximumf %28, %29 : vector<16x32xf32>
    %c0_11 = arith.constant 0 : index
    %c0_12 = arith.constant 0 : index
    %31 = vector.load %arg6[%c0_11, %c0_12] : memref<16x32xf32, #tpu.memory_space<vmem>>, vector<16x32xf32>
    tpu.vector_store %arg6[%c0_11, %c0_12], %30 {strides = array<i32>} : memref<16x32xf32, #tpu.memory_space<vmem>>, vector<16x32xf32>,
    return
  }
  func.func @transform_0(%arg0: i32) -> (i32, i32) {
    %c0_i32 = arith.constant 0 : i32
    %c0_i32_0 = arith.constant 0 : i32
    return %arg0, %c0_i32 : i32, i32
  }
  func.func @transform_1(%arg0: i32) -> (i32, i32) {
    %c0_i32 = arith.constant 0 : i32
    %c0_i32_0 = arith.constant 0 : i32
    %c0_i32_1 = arith.constant 0 : i32
    return %c0_i32, %c0_i32_0 : i32, i32
  }
  func.func @transform_2(%arg0: i32) -> (i32, i32) {
    %c0_i32 = arith.constant 0 : i32
    %c0_i32_0 = arith.constant 0 : i32
    %c0_i32_1 = arith.constant 0 : i32
    return %c0_i32, %c0_i32_0 : i32, i32
  }
  func.func @transform_3(%arg0: i32) -> (i32, i32) {
    %c0_i32 = arith.constant 0 : i32
    %c0_i32_0 = arith.constant 0 : i32
    %c0_i32_1 = arith.constant 0 : i32
    return %c0_i32, %c0_i32_0 : i32, i32
  }
  func.func @transform_4(%arg0: i32) -> (i32, i32) {
    %c0_i32 = arith.constant 0 : i32
    %c0_i32_0 = arith.constant 0 : i32
    %c0_i32_1 = arith.constant 0 : i32
    return %c0_i32, %c0_i32_0 : i32, i32
  }
  func.func @transform_5(%arg0: i32) -> (i32, i32) {
    %c0_i32 = arith.constant 0 : i32
    %c0_i32_0 = arith.constant 0 : i32
    return %arg0, %c0_i32 : i32, i32
  }
}

</mosaic_0001>

<bundles_post_ra>
// kernel: product_encoder_forward.1
= control target key start
LH: loop header
LB: loop body
LE: loop exit
PB: predicated region body
PF: predicated region fallthrough
CT: control target
= control target key end

     0   :  { %v438_v1 = vmov 2   ;;  %v439_v2 = vmov 0   ;;  %s580_s0 = inlined_call_operand.vmem [shape: f32[16,3], index: 0, kind: input, shape index: {}]   ;;  %s581_s1 = inlined_call_operand.vmem [shape: f32[3,64], index: 1, kind: input, shape index: {}]   ;;  %s582_s2 = inlined_call_operand.vmem [shape: f32[1,64], index: 2, kind: input, shape index: {}]   ;;  %s583_s3 = inlined_call_operand.vmem [shape: f32[64,32], index: 3, kind: input, shape index: {}]   ;;  %s584_s4 = inlined_call_operand.vmem [shape: f32[1,32], index: 4, kind: input, shape index: {}]   ;;  %s585_s5 = inlined_call_operand.hbm [shape: f32[16,32], index: 5, kind: output, shape index: {}]  }
   0x1   :  { %v21_v0 = vld [vmem:[%s580_s0] sm:$0xff]  ;;  %405 = vset.pattern.permute.xlu1 %v438_v1  ;;  %403 = vset.pattern.permute.xlu0 %v439_v2 }
   0x2   :  { %51 = vperm.xlu1 %405, %v21_v0   ;;  %26 = vperm.xlu0 %403, %v21_v0  }
   0x3   :  { %10 = vsyncpa [#allocation3], 0  ;;  %v22_v3 = vld [vmem:[%s580_s0 + $0x8] sm:$0xff]  ;;  %v440_v4 = vmov 1   ;;  %v78_v5 = vld [vmem:[%s583_s3 + $0x38] sm:$0xff]  ;;  %vm83_vm0 = vcmask 523264  }
   0x4   :  { %407 = vset.pattern.permute.xlu2 %v440_v4  ;;  %v483_v6 = vand.u32 4294901760, %v78_v5  ;;  %v77_v7 = vld [vmem:[%s583_s3 + $0x30] sm:$0xff]  ;;  %v76_v10 = vld [vmem:[%s583_s3 + $0x28] sm:$0xff]  ;;  %v75_v14 = vld [vmem:[%s583_s3 + $0x20] sm:$0xff]  ;;  %s369_s18 = sshll.u32 %s585_s5, 4  ;;  %vm360_vm1 = vcmask 261120   ;;  %s370_s18 = int_to_ptr.hbm [resolvable:$true] %s369_s18 }
   0x5   :  { %42 = vperm.xlu2 %407, %v22_v3   ;;  %v489_v9 = vand.u32 4294901760, %v77_v7  ;;  %v499_v13 = vand.u32 4294901760, %v76_v10  ;;  %v510_v18 = vand.u32 4294901760, %v75_v14  ;;  %v74_v19 = vld [vmem:[%s583_s3 + $0x18] sm:$0xff]  ;;  %v73_v25 = vld [vmem:[%s583_s3 + $0x10] sm:$0xff]  ;;  %v72_v31 = vld [vmem:[%s583_s3 + $0x8] sm:$0xff] }
   0x6   :  { %v140_v8 = vsub.f32 %v78_v5, %v483_v6  ;;  %248 = vmatpush.msra.mxu3 %v483_v6  ;;  %99 = vmatpush.msra.mxu0 %v483_v6  ;;  %v522_v24 = vand.u32 4294901760, %v74_v19  ;;  %v529_v29 = vand.u32 4294901760, %v73_v25  ;;  %v538_v35 = vand.u32 4294901760, %v72_v31  ;;  %v71_v37 = vld [vmem:[%s583_s3] sm:$0xff]  ;;  %s442_s19 = smov 128   ;;  %s443_s20 = smov 8  }
   0x7   :  { %v146_v12 = vsub.f32 %v77_v7, %v489_v9  ;;  %v152_v17 = vsub.f32 %v76_v10, %v499_v13  ;;  %v158_v23 = vsub.f32 %v75_v14, %v510_v18  ;;  %v112_v41 = vand.u32 4294901760, %v71_v37  ;;  %v23_v56 = vld [vmem:[%s581_s1] sm:$0x7] }
   0x8   :  { %v496_v11 = vand.u32 4294901760, %v140_v8  ;;  %206 = vmatpush.msra.mxu2 %v140_v8  ;;  %250 = vmatpush.msra.mxu3 %v489_v9  ;;  %v164_v30 = vsub.f32 %v74_v19, %v522_v24  ;;  %v170_v34 = vsub.f32 %v73_v25, %v529_v29  ;;  %v176_v40 = vsub.f32 %v72_v31, %v538_v35 }
   0x9   :  { %101 = vmatpush.msra.mxu0 %v489_v9  ;;  %v507_v16 = vand.u32 4294901760, %v146_v12  ;;  %v518_v22 = vand.u32 4294901760, %v152_v17  ;;  %v159_v28 = vand.u32 4294901760, %v158_v23  ;;  %v182_v45 = vsub.f32 %v71_v37, %v112_v41 }
   0xa   :  { %406 = vset.pattern.permute.xlu1 %v439_v2  ;;  %404 = vset.pattern.permute.xlu0 %v440_v4  ;;  %v142_v15 = vsub.f32 %v140_v8, %v496_v11  ;;  %v165_v36 = vand.u32 4294901760, %v164_v30  ;;  %v171_v39 = vand.u32 4294901760, %v170_v34  ;;  %v177_v44 = vand.u32 4294901760, %v176_v40 }
   0xb   :  { %31 = vperm.xlu1 %406, %v22_v3   ;;  %38 = vperm.xlu0 %404, %v21_v0   ;;  %v148_v21 = vsub.f32 %v146_v12, %v507_v16  ;;  %v154_v27 = vsub.f32 %v152_v17, %v518_v22  ;;  %v160_v33 = vsub.f32 %v158_v23, %v159_v28  ;;  %v183_v49 = vand.u32 4294901760, %v182_v45 }
   0xc   :  { %209 = vmatpush.msra.mxu2 %v146_v12  ;;  %252 = vmatpush.msra.mxu3 %v499_v13  ;;  %v143_v20 = vand.u32 4294901760, %v142_v15  ;;  %v166_v42 = vsub.f32 %v164_v30, %v165_v36  ;;  %v172_v43 = vsub.f32 %v170_v34, %v171_v39  ;;  %v178_v48 = vsub.f32 %v176_v40, %v177_v44 }
   0xd   :  { %408 = vset.pattern.permute.xlu2 %v438_v1  ;;  %103 = vmatpush.msra.mxu0 %v499_v13  ;;  %v149_v26 = vand.u32 4294901760, %v148_v21  ;;  %v155_v32 = vand.u32 4294901760, %v154_v27  ;;  %v161_v38 = vand.u32 4294901760, %v160_v33  ;;  %v184_v51 = vsub.f32 %v182_v45, %v183_v49  ;;  %v411_v27 = vld [vmem:[%s584_s4] ss:$0 sm:$0xff]  ;;  %s441_s4 = smov [#allocation2]  }
   0xe   :  { %55 = vperm.xlu2 %408, %v22_v3   ;;  %212 = vmatpush.msra.mxu2 %v152_v17  ;;  %v167_v46 = vand.u32 4294901760, %v166_v42  ;;  %v173_v47 = vand.u32 4294901760, %v172_v43  ;;  %v179_v50 = vand.u32 4294901760, %v178_v48  ;;  %v45_v57 = vperm.slane %v23_v56, 1  ;;  %s367_s15 = sshll.u32 %s441_s4, 4  ;;  %s368_s15 = int_to_ptr.vmem [resolvable:$true] %s367_s15 }
   0xf   :  { %254 = vmatpush.msra.mxu3 %v510_v18  ;;  %105 = vmatpush.msra.mxu0 %v510_v18  ;;  %v185_v52 = vand.u32 4294901760, %v184_v51  ;;  %v34_v58 = vperm.slane %v23_v56, 0  ;;  %v58_v60 = vperm.slane %v23_v56, 2 }
  0x10   :  { %144 = vmatpush.msra.mxu1 %v143_v20  ;;  %215 = vmatpush.msra.mxu2 %v158_v23 }
  0x11   :  { %256 = vmatpush.msra.mxu3 %v522_v24  ;;  %107 = vmatpush.msra.mxu0 %v522_v24 }
  0x12   :  { %150 = vmatpush.msra.mxu1 %v149_v26  ;;  %218 = vmatpush.msra.mxu2 %v164_v30 }
  0x13   :  { %409 = vset.pattern.permute.xlu0 %v438_v1  ;;  %258 = vmatpush.msra.mxu3 %v529_v29 }
  0x14   :  { %156 = vmatpush.msra.mxu1 %v155_v32  ;;  %109 = vmatpush.msra.mxu0 %v529_v29 }
  0x15   :  { %221 = vmatpush.msra.mxu2 %v170_v34  ;;  %260 = vmatpush.msra.mxu3 %v538_v35 }
  0x16   :  { %162 = vmatpush.msra.mxu1 %v161_v38  ;;  %111 = vmatpush.msra.mxu0 %v538_v35 }
  0x17   :  { %224 = vmatpush.msra.mxu2 %v176_v40  ;;  %262 = vmatpush.msra.mxu3 %v112_v41 }
  0x18   :  { %113 = vmatpush.msra.mxu0 %v112_v41  ;;  %168 = vmatpush.msra.mxu1 %v167_v46 }
  0x19   :  { %389 = vmatpush.msrb.mxu3 %v483_v6  ;;  %227 = vmatpush.msra.mxu2 %v182_v45 }
  0x1a   :  { %174 = vmatpush.msra.mxu1 %v173_v47  ;;  %287 = vmatpush.msrb.mxu0 %v496_v11 }
  0x1b   :  { %381 = vmatpush.msrb.mxu2 %v496_v11  ;;  %390 = vmatpush.msrb.mxu3 %v489_v9 }
  0x1c   :  { %180 = vmatpush.msra.mxu1 %v179_v50  ;;  %291 = vmatpush.msrb.mxu0 %v507_v16 }
  0x1d   :  { %382 = vmatpush.msrb.mxu2 %v507_v16  ;;  %391 = vmatpush.msrb.mxu3 %v499_v13 }
  0x1e   :  { %186 = vmatpush.msra.mxu1 %v185_v52  ;;  %295 = vmatpush.msrb.mxu0 %v518_v22 }
  0x1f   :  { %383 = vmatpush.msrb.mxu2 %v518_v22  ;;  %392 = vmatpush.msrb.mxu3 %v510_v18 }
  0x20   :  { %334 = vmatpush.msrb.mxu1 %v483_v6  ;;  %299 = vmatpush.msrb.mxu0 %v159_v28  ;;  %v410_v6 = vld [vmem:[%s582_s2] ss:$0 sm:$0xff] }
  0x21   :  { %384 = vmatpush.msrb.mxu2 %v159_v28  ;;  %393 = vmatpush.msrb.mxu3 %v522_v24 }
  0x22   :  { %336 = vmatpush.msrb.mxu1 %v489_v9  ;;  %303 = vmatpush.msrb.mxu0 %v165_v36 }
  0x23   :  { %385 = vmatpush.msrb.mxu2 %v165_v36  ;;  %394 = vmatpush.msrb.mxu3 %v529_v29 }
  0x24   :  { %338 = vmatpush.msrb.mxu1 %v499_v13  ;;  %307 = vmatpush.msrb.mxu0 %v171_v39 }
  0x25   :  { %386 = vmatpush.msrb.mxu2 %v171_v39  ;;  %395 = vmatpush.msrb.mxu3 %v538_v35 }
  0x26   :  { %340 = vmatpush.msrb.mxu1 %v510_v18  ;;  %311 = vmatpush.msrb.mxu0 %v177_v44 }
  0x27   :  { %387 = vmatpush.msrb.mxu2 %v177_v44  ;;  %396 = vmatpush.msrb.mxu3 %v112_v41 }
  0x28   :  { %342 = vmatpush.msrb.mxu1 %v522_v24  ;;  %315 = vmatpush.msrb.mxu0 %v183_v49 }
  0x29   :  { %388 = vmatpush.msrb.mxu2 %v183_v49 }
  0x2a   :  { %344 = vmatpush.msrb.mxu1 %v529_v29 }
  0x2c   :  { %346 = vmatpush.msrb.mxu1 %v538_v35 }
  0x2e   :  { %348 = vmatpush.msrb.mxu1 %v112_v41 }
  0x5f   :  { %v43_v53 = vpop.permute.xlu2 %42 }
  0x60   :  { %v47_v61 = vmul.f32 %v45_v57, %v43_v53 }
  0x68   :  { %v56_v59 = vpop.permute.xlu2 %55 }
  0x69   :  { %v60_v3 = vmul.f32 %v58_v60, %v56_v59 }
  0x74   :  { %v27_v54 = vpop.permute.xlu0 %26  ;;  %v52_v55 = vpop.permute.xlu1 %51 }
  0x75   :  { %v35_v0 = vmul.f32 %v34_v58, %v27_v54  ;;  %v59_v4 = vmul.f32 %v58_v60, %v52_v55 }
  0x7d   :  { %v32_v62 = vpop.permute.xlu1 %31  ;;  %v39_v63 = vpop.permute.xlu0 %38 }
  0x7e   :  { %v36_v1 = vmul.f32 %v34_v58, %v32_v62  ;;  %v46_v2 = vmul.f32 %v45_v57, %v39_v63 }
  0x80   :  { %v49_v5 = vadd.f32 %v47_v61, %v36_v1  ;;  %v48_v7 = vadd.f32 %v46_v2, %v35_v0 }
  0x82   :  { %v61_v8 = vadd.f32 %v59_v4, %v48_v7  ;;  %v62_v9 = vadd.f32 %v60_v3, %v49_v5 }
  0x84   :  { %v67_v10 = vadd.f32 %v410_v6, %v61_v8  ;;  %v68_v11 = vadd.f32 %v410_v6, %v62_v9 }
  0x86   :  { %v69_v12 = vmax.f32 %v67_v10, 0.0  ;;  %v70_v13 = vmax.f32 %v68_v11, 0.0 }
  0x88   :  { %v88_v14 = vsel %vm83_vm0, %v70_v13, 0  ;;  %v85_v15 = vsel %vm83_vm0, %v69_v12, 0 }
  0x89   :  { %v114_v16 = vand.u32 4294901760, %v85_v15  ;;  %v122_v17 = vand.u32 4294901760, %v88_v14 }
  0x8b   :  { %188 = vmatmul.f32.vlgmr.msra.gmra.mxu1 %v114_v16  ;;  %v115_v18 = vsub.f32 %v85_v15, %v114_v16  ;;  %v123_v20 = vsub.f32 %v88_v14, %v122_v17 }
  0x8d   :  { %230 = vmatmul.f32.vlgmr.msra.gmra.mxu2 %v115_v18  ;;  %v116_v19 = vand.u32 4294901760, %v115_v18  ;;  %v124_v23 = vand.u32 4294901760, %v123_v20 }
  0x8f   :  { %266 = vmatmul.f32.vlgmr.msra.gmra.mxu3 %v116_v19  ;;  %v117_v21 = vsub.f32 %v115_v18, %v116_v19  ;;  %v125_v24 = vsub.f32 %v123_v20, %v124_v23 }
  0x91   :  { %v118_v22 = vand.u32 4294901760, %v117_v21  ;;  %v126_v25 = vand.u32 4294901760, %v125_v24 }
  0x93   :  { %119 = vmatmul.f32.vlgmr.msra.gmra.mxu0 %v118_v22  ;;  %192 = vmatmul.f32.gmra.mxu1 %v122_v17 }
  0x95   :  { %235 = vmatmul.f32.gmra.mxu2 %v123_v20 }
  0x97   :  { %272 = vmatmul.f32.gmra.mxu3 %v124_v23 }
  0x9b   :  { %127 = vmatmul.f32.gmra.mxu0 %v126_v25  ;;  %350 = vmatmul.f32.vlgmr.msrb.gmra.mxu1 %v114_v16 }
  0x9d   :  { %321 = vmatmul.f32.vlgmr.msrb.gmra.mxu2 %v122_v17 }
  0x9f   :  { %354 = vmatmul.f32.vlgmr.msrb.gmra.mxu3 %v122_v17 }
  0xa3   :  { %317 = vmatmul.f32.vlgmr.msrb.gmra.mxu0 %v114_v16 }
 0x108   :  { %v189_v26 = vpop.f32.mrf.mxu1 }
 0x110   :  { %v120_v28 = vpop.f32.mrf.mxu0  ;;  %v231_v29 = vpop.f32.mrf.mxu2 }
 0x111   :  { %v121_v31 = vadd.f32 %v411_v27, %v120_v28  ;;  %v193_v33 = vpop.f32.mrf.mxu1 }
 0x112   :  { %v267_v30 = vpop.f32.mrf.mxu3 }
 0x113   :  { %v190_v32 = vadd.f32 %v189_v26, %v121_v31 }
 0x115   :  { %v232_v38 = vadd.f32 %v231_v29, %v190_v32 }
 0x117   :  { %v268_v41 = vadd.f32 %v267_v30, %v232_v38 }
 0x118   :  { %v128_v34 = vpop.f32.mrf.mxu0  ;;  %v236_v36 = vpop.f32.mrf.mxu2 }
 0x119   :  { %v129_v35 = vadd.f32 %v411_v27, %v128_v34  ;;  %v351_v46 = vpop.f32.mrf.mxu1 }
 0x11a   :  { %v273_v37 = vpop.f32.mrf.mxu3 }
 0x11b   :  { %v194_v39 = vadd.f32 %v193_v33, %v129_v35 }
 0x11d   :  { %v237_v40 = vadd.f32 %v236_v36, %v194_v39 }
 0x11f   :  { %v274_v42 = vadd.f32 %v273_v37, %v237_v40 }
 0x120   :  { %v318_v43 = vpop.f32.mrf.mxu0  ;;  %v322_v45 = vpop.f32.mrf.mxu2 }
 0x121   :  { %v319_v44 = vadd.f32 %v318_v43, %v268_v41  ;;  %v323_v47 = vadd.f32 %v322_v45, %v274_v42 }
 0x122   :  { %v355_v48 = vpop.f32.mrf.mxu3 }
 0x123   :  { %v352_v49 = vadd.f32 %v351_v46, %v319_v44  ;;  %v356_v50 = vadd.f32 %v355_v48, %v323_v47 }
 0x125   :  { %v358_v51 = vmax.f32 %v352_v49, 0.0  ;;  %v359_v52 = vmax.f32 %v356_v50, 0.0 }
 0x127   :  { %361 = vst.msk [vmem:[#allocation2] sm:$0xff] %vm360_vm1, %v358_v51 }
 0x128   :  { %362 = vst.msk [vmem:[#allocation2 + $0x8] sm:$0xff] %vm360_vm1, %v359_v52 }
 0x129   :  { %375 = dma.vmem_to_hbm [thread:$0]  %s368_s15, 256, %s370_s18, [#allocation3], %s442_s19, %s442_s19, %s443_s20  }
 0x12a   :  { %436 = dma.done.wait [#allocation3], 256  }
 0x12b   :  { %437 = vsyncadd [#allocation3], 4294967040 }
 0x12c   :  { %380 = vsyncpa [#allocation3], 1 }

</bundles_post_ra>
